<compile_context>
chip_gen: v6e
topology: v6e:2x2x1
jax: 0.10.0
libtpu: 0.0.40
codegen_flags: <defaults>
</compile_context>

<pallas_src>
import functools
import math

import jax
import jax.numpy as jnp
from jax.experimental import pallas as pl
from jax.experimental.pallas import tpu as pltpu


def _round_up(x: int, m: int) -> int:
    return ((x + m - 1) // m) * m


def _attention_head_kernel(x_ref, y_ref, wq_ref, bq_ref, wkv_ref, bkv_ref,
                           o_ref, k_sc, v_sc, *, p_pad, tile_q, mask,
                           approx_recip):
    qi = pl.program_id(1)

    # K / V projection: computed once per batch (qi == 0), cached in VMEM
    # scratch, reused across all query tiles of this batch (qi is "arbitrary").
    @pl.when(qi == 0)
    def _():
        y = y_ref[0]                                                  # [Sy, Dy]
        kv = jnp.dot(y, wkv_ref[...], preferred_element_type=jnp.float32)
        kv = kv + bkv_ref[...]                                        # [Sy, 2Pp]
        kv = kv.astype(k_sc.dtype)
        k_sc[...] = kv[:, :p_pad]
        v_sc[...] = kv[:, p_pad:]

    # Q projection for this query tile (1/sqrt(P) pre-folded into Wq / bq).
    x = x_ref[0]                                                      # [tq, Dx]
    q = jnp.dot(x, wq_ref[...], preferred_element_type=jnp.float32) + bq_ref[...]
    q = q.astype(k_sc.dtype)                                          # [tq, Pp]

    # Scores + softmax with deferred normalization.
    scores = jax.lax.dot_general(
        q, k_sc[...], (((1,), (1,)), ((), ())),
        preferred_element_type=jnp.float32)                           # [tq, Sy]
    m = jnp.max(scores, axis=-1, keepdims=True)
    p = jnp.exp(scores - m)
    l = jnp.sum(p, axis=-1, keepdims=True)                            # [tq, 1]

    if mask:
        # torch.triu(softmax(scores), diagonal=1): strictly-upper triangle kept
        # AFTER softmax, rows NOT renormalized.  Masking the unnormalized p and
        # normalizing after A@V is mathematically identical (l is per-row).
        row = qi * tile_q + jax.lax.broadcasted_iota(jnp.int32, (p.shape[0], 1), 0)
        col = jax.lax.broadcasted_iota(jnp.int32, (1, p.shape[1]), 1)
        p = jnp.where(col > row, p, 0.0)

    out = jnp.dot(p.astype(v_sc.dtype), v_sc[...],
                  preferred_element_type=jnp.float32)                 # [tq, Pp]
    inv_l = pl.reciprocal(l, approx=approx_recip)
    o_ref[0] = (out * inv_l).astype(o_ref.dtype)


def _vmem_capacity_bytes() -> int:
    try:
        return int(pltpu.get_tpu_info().vmem_capacity_bytes)
    except Exception:
        return 64 * 1024 * 1024  # conservative: v7x per-TC VMEM


def _vmem_bytes_estimate(tq, sy, dx, dy, p_pad, item):
    score_tmp = 4 * tq * sy * 4                     # scores / p / where temps (f32)
    kv_scr = 2 * sy * p_pad * item                  # K & V scratch
    kv_tmp = sy * 2 * p_pad * 4                     # fused K/V f32 temporary
    q_tmp = tq * p_pad * 4
    x_blk = 2 * tq * dx * item                      # double-buffered tiles
    y_blk = 2 * sy * dy * item
    w_blk = 2 * (dx * p_pad + dy * 2 * p_pad) * item + 2 * 3 * p_pad * 4
    o_blk = 2 * tq * p_pad * 4
    return score_tmp + kv_scr + kv_tmp + q_tmp + x_blk + y_blk + w_blk + o_blk


def _pick_tile_q(sx, sy, dx, dy, p_pad, item, budget_bytes, cap=512):
    # Full-extent query block when it fits (always legal w.r.t. (8,128) rule).
    if sx <= cap and _vmem_bytes_estimate(sx, sy, dx, dy, p_pad, item) <= budget_bytes:
        return sx
    tq = min(cap, max(8, (sx // 8) * 8))
    while tq > 8 and _vmem_bytes_estimate(tq, sy, dx, dy, p_pad, item) > budget_bytes:
        tq -= 8
    return min(max(tq, 8), max(sx, 1))


def attention_head(x, y, wq, bq, wk, bk, wv, bv, *, mask: bool = False,
                   compute_dtype=None, tile_q: int | None = None):
    """Pallas TPU implementation of AttentionHead.forward(x, y, mask)."""
    B, Sx, Dx = x.shape
    By, Sy, Dy = y.shape
    assert B == By
    P = wq.shape[0]
    assert wq.shape == (P, Dx) and wk.shape == (P, Dy) and wv.shape == (P, Dy)
    assert bq.shape == (P,) and bk.shape == (P,) and bv.shape == (P,)

    out_dtype = x.dtype
    if compute_dtype is None:
        compute_dtype = x.dtype            # respect input dtype (no forced upcast)
    compute_dtype = jnp.dtype(compute_dtype)
    item = compute_dtype.itemsize

    # Lane-dense projection dim: pad to a multiple of 128, slice off at the end.
    P_pad = max(128, _round_up(P, 128))
    scale = 1.0 / math.sqrt(float(P))
    f32 = jnp.float32

    # Pre-transposed ([D, P_pad]) zero-padded weights; 1/sqrt(P) folded into Q.
    wq_t = jnp.zeros((Dx, P_pad), f32).at[:, :P].set(wq.astype(f32).T * scale)
    wk_t = jnp.zeros((Dy, P_pad), f32).at[:, :P].set(wk.astype(f32).T)
    wv_t = jnp.zeros((Dy, P_pad), f32).at[:, :P].set(wv.astype(f32).T)
    wkv_t = jnp.concatenate([wk_t, wv_t], axis=1)            # fused K|V weights
    bq_p = jnp.zeros((1, P_pad), f32).at[0, :P].set(bq.astype(f32) * scale)
    bkv_p = (jnp.zeros((1, 2 * P_pad), f32)
             .at[0, :P].set(bk.astype(f32))
             .at[0, P_pad:P_pad + P].set(bv.astype(f32)))

    x_c = x.astype(compute_dtype)
    y_c = y.astype(compute_dtype)
    wq_c = wq_t.astype(compute_dtype)
    wkv_c = wkv_t.astype(compute_dtype)

    phys = _vmem_capacity_bytes()
    tile_budget = min(int(0.4 * phys), 40 * 1024 * 1024)
    if tile_q is None:
        tile_q = _pick_tile_q(Sx, Sy, Dx, Dy, P_pad, item, tile_budget)
    n_q = pl.cdiv(Sx, tile_q)

    est = _vmem_bytes_estimate(tile_q, Sy, Dx, Dy, P_pad, item)
    vmem_limit = int(min(max(32 * 1024 * 1024, 2 * est), int(0.75 * phys)))

    approx_recip = bool(compute_dtype != jnp.float32)

    kernel = functools.partial(
        _attention_head_kernel, p_pad=P_pad, tile_q=tile_q, mask=bool(mask),
        approx_recip=approx_recip)

    out = pl.pallas_call(
        kernel,
        out_shape=jax.ShapeDtypeStruct((B, Sx, P_pad), out_dtype),
        grid_spec=pltpu.PrefetchScalarGridSpec(
            num_scalar_prefetch=0,
            grid=(B, n_q),
            in_specs=[
                pl.BlockSpec((1, tile_q, Dx), lambda b, qi: (b, qi, 0)),   # x tile
                pl.BlockSpec((1, Sy, Dy), lambda b, qi: (b, 0, 0)),        # full y
                pl.BlockSpec((Dx, P_pad), lambda b, qi: (0, 0)),           # Wq^T (resident)
                pl.BlockSpec((1, P_pad), lambda b, qi: (0, 0)),            # bq
                pl.BlockSpec((Dy, 2 * P_pad), lambda b, qi: (0, 0)),       # [Wk^T|Wv^T]
                pl.BlockSpec((1, 2 * P_pad), lambda b, qi: (0, 0)),        # [bk|bv]
            ],
            out_specs=pl.BlockSpec((1, tile_q, P_pad), lambda b, qi: (b, qi, 0)),
            scratch_shapes=[
                pltpu.VMEM((Sy, P_pad), compute_dtype),   # K cache (per batch)
                pltpu.VMEM((Sy, P_pad), compute_dtype),   # V cache (per batch)
            ]),
        compiler_params=pltpu.CompilerParams(
            # batch axis independent -> "parallel" (megacore / v7x 2 TCs);
            # query-tile axis must be "arbitrary" so K/V scratch persists.
            dimension_semantics=("parallel", "arbitrary"),
            vmem_limit_bytes=vmem_limit),
    )(x_c, y_c, wq_c, bq_p, wkv_c, bkv_p)

    return out[:, :, :P]


def attention_head_ref(x, y, wq, bq, wk, bk, wv, bv, mask: bool = False):
    """Pure-JAX reference mirroring the PyTorch module."""
    P = wq.shape[0]
    q = x @ wq.T + bq
    k = y @ wk.T + bk
    v = y @ wv.T + bv
    scores = jnp.einsum("bqd,bkd->bqk", q, k) / jnp.sqrt(jnp.float32(P))
    attn = jax.nn.softmax(scores, axis=-1)
    if mask:
        r = jnp.arange(scores.shape[-2])[:, None]
        c = jnp.arange(scores.shape[-1])[None, :]
        attn = jnp.where(c > r, attn, 0.0)
    return jnp.einsum("bqk,bkd->bqd", attn, v)


if __name__ == "__main__":
    key = jax.random.PRNGKey(0)
    ks = jax.random.split(key, 8)

    B, Sx, Sy = 2, 8, 8
    x_size = y_size = 32
    proj_dim = 32

    x = jax.random.normal(ks[0], (B, Sx, x_size), dtype=jnp.float32)
    y = jax.random.normal(ks[1], (B, Sy, y_size), dtype=jnp.float32)

    lim_x = 1.0 / math.sqrt(x_size)
    lim_y = 1.0 / math.sqrt(y_size)
    wq = jax.random.uniform(ks[2], (proj_dim, x_size), jnp.float32, -lim_x, lim_x)
    bq = jax.random.uniform(ks[3], (proj_dim,), jnp.float32, -lim_x, lim_x)
    wk = jax.random.uniform(ks[4], (proj_dim, y_size), jnp.float32, -lim_y, lim_y)
    bk = jax.random.uniform(ks[5], (proj_dim,), jnp.float32, -lim_y, lim_y)
    wv = jax.random.uniform(ks[6], (proj_dim, y_size), jnp.float32, -lim_y, lim_y)
    bv = jax.random.uniform(ks[7], (proj_dim,), jnp.float32, -lim_y, lim_y)

    # f32 path (matches module numerics): mask=False and mask=True.
    for m in (False, True):
        out = jax.block_until_ready(
            attention_head(x, y, wq, bq, wk, bk, wv, bv, mask=m))
        ref = attention_head_ref(x, y, wq, bq, wk, bk, wv, bv, mask=m)
        err = float(jnp.max(jnp.abs(out - ref)))
        assert jnp.allclose(out, ref, rtol=2e-5, atol=2e-5), (m, err)

    # bf16 MXU path (perf configuration) -- looser tolerance expected for bf16.
    out_bf = jax.block_until_ready(
        attention_head(x, y, wq, bq, wk, bk, wv, bv, mask=False,
                       compute_dtype=jnp.bfloat16))
    ref = attention_head_ref(x, y, wq, bq, wk, bk, wv, bv, mask=False)
    err_bf = float(jnp.max(jnp.abs(out_bf.astype(jnp.float32) - ref)))
    assert jnp.allclose(out_bf.astype(jnp.float32), ref, rtol=5e-2, atol=5e-2), err_bf

    print("KERNEL_OK")
</pallas_src>

<mosaic_0001>
module attributes {stable_mosaic.version = 11 : i64} {
  func.func @_attention_head_kernel(%arg0: i32, %arg1: i32, %arg2: memref<1x8x32xf32, #tpu.memory_space<vmem>>, %arg3: memref<1x8x32xf32, #tpu.memory_space<vmem>>, %arg4: memref<32x128xf32, #tpu.memory_space<vmem>>, %arg5: memref<1x128xf32, #tpu.memory_space<vmem>>, %arg6: memref<32x256xf32, #tpu.memory_space<vmem>>, %arg7: memref<1x256xf32, #tpu.memory_space<vmem>>, %arg8: memref<1x8x128xf32, #tpu.memory_space<vmem>>, %arg9: memref<8x128xf32, #tpu.memory_space<vmem>>, %arg10: memref<8x128xf32, #tpu.memory_space<vmem>>) attributes {dimension_semantics = [#tpu.dimension_semantics<parallel>, #tpu.dimension_semantics<arbitrary>], iteration_bounds = array<i64: 2, 1>, scalar_prefetch = 0 : i64, scratch_operands = 2 : i64, tpu.core_type = #tpu.core_type<tc>, window_params = [{transform_indices = @transform_0, window_bounds = array<i64: 1, 8, 32>}, {transform_indices = @transform_1, window_bounds = array<i64: 1, 8, 32>}, {pipeline_mode = #tpu.pipeline_mode<synchronous>, transform_indices = @transform_2, window_bounds = array<i64: 32, 128>}, {pipeline_mode = #tpu.pipeline_mode<synchronous>, transform_indices = @transform_3, window_bounds = array<i64: 1, 128>}, {pipeline_mode = #tpu.pipeline_mode<synchronous>, transform_indices = @transform_4, window_bounds = array<i64: 32, 256>}, {pipeline_mode = #tpu.pipeline_mode<synchronous>, transform_indices = @transform_5, window_bounds = array<i64: 1, 256>}, {transform_indices = @transform_6, window_bounds = array<i64: 1, 8, 128>}]} {
    %c0_i32 = arith.constant 0 : i32
    %0 = arith.cmpi eq, %arg1, %c0_i32 : i32
    %1 = arith.extui %0 : i1 to i32
    %c0_i32_0 = arith.constant 0 : i32
    %2 = arith.cmpi ne, %1, %c0_i32_0 : i32
    scf.if %2 {
      %c0_18 = arith.constant 0 : index
      %c0_19 = arith.constant 0 : index
      %c0_20 = arith.constant 0 : index
      %27 = vector.load %arg3[%c0_18, %c0_19, %c0_20] : memref<1x8x32xf32, #tpu.memory_space<vmem>>, vector<1x8x32xf32>
      %28 = vector.shape_cast %27 : vector<1x8x32xf32> to vector<8x32xf32>
      %c0_21 = arith.constant 0 : index
      %c0_22 = arith.constant 0 : index
      %29 = vector.load %arg6[%c0_21, %c0_22] : memref<32x256xf32, #tpu.memory_space<vmem>>, vector<32x256xf32>
      %cst_23 = arith.constant dense<0.000000e+00> : vector<8x256xf32>
      %30 = tpu.matmul %28, %29, %cst_23 {dimension_numbers = #tpu.dot_dimension_numbers<[1], [0], [0], [1], [0, 0, 1, 1], [], []>} : vector<8x32xf32>, vector<32x256xf32>, vector<8x256xf32> -> vector<8x256xf32>
      %c0_24 = arith.constant 0 : index
      %c0_25 = arith.constant 0 : index
      %31 = vector.load %arg7[%c0_24, %c0_25] : memref<1x256xf32, #tpu.memory_space<vmem>>, vector<1x256xf32>
      %32 = vector.broadcast %31 : vector<1x256xf32> to vector<8x256xf32>
      %33 = arith.addf %30, %32 : vector<8x256xf32>
      %34 = vector.extract_strided_slice %33 {offsets = [0, 0], sizes = [8, 128], strides = [1, 1]} : vector<8x256xf32> to vector<8x128xf32>
      %c0_26 = arith.constant 0 : index
      %c0_27 = arith.constant 0 : index
      %35 = vector.load %arg9[%c0_26, %c0_27] : memref<8x128xf32, #tpu.memory_space<vmem>>, vector<8x128xf32>
      tpu.vector_store %arg9[%c0_26, %c0_27], %34 {strides = array<i32>} : memref<8x128xf32, #tpu.memory_space<vmem>>, vector<8x128xf32>,
      %36 = vector.extract_strided_slice %33 {offsets = [0, 128], sizes = [8, 128], strides = [1, 1]} : vector<8x256xf32> to vector<8x128xf32>
      %c0_28 = arith.constant 0 : index
      %c0_29 = arith.constant 0 : index
      %37 = vector.load %arg10[%c0_28, %c0_29] : memref<8x128xf32, #tpu.memory_space<vmem>>, vector<8x128xf32>
      tpu.vector_store %arg10[%c0_28, %c0_29], %36 {strides = array<i32>} : memref<8x128xf32, #tpu.memory_space<vmem>>, vector<8x128xf32>,
    } else {
    }
    %c0 = arith.constant 0 : index
    %c0_1 = arith.constant 0 : index
    %c0_2 = arith.constant 0 : index
    %3 = vector.load %arg2[%c0, %c0_1, %c0_2] : memref<1x8x32xf32, #tpu.memory_space<vmem>>, vector<1x8x32xf32>
    %4 = vector.shape_cast %3 : vector<1x8x32xf32> to vector<8x32xf32>
    %c0_3 = arith.constant 0 : index
    %c0_4 = arith.constant 0 : index
    %5 = vector.load %arg4[%c0_3, %c0_4] : memref<32x128xf32, #tpu.memory_space<vmem>>, vector<32x128xf32>
    %cst = arith.constant dense<0.000000e+00> : vector<8x128xf32>
    %6 = tpu.matmul %4, %5, %cst {dimension_numbers = #tpu.dot_dimension_numbers<[1], [0], [0], [1], [0, 0, 1, 1], [], []>} : vector<8x32xf32>, vector<32x128xf32>, vector<8x128xf32> -> vector<8x128xf32>
    %c0_5 = arith.constant 0 : index
    %c0_6 = arith.constant 0 : index
    %7 = vector.load %arg5[%c0_5, %c0_6] : memref<1x128xf32, #tpu.memory_space<vmem>>, vector<1x128xf32>
    %8 = vector.broadcast %7 : vector<1x128xf32> to vector<8x128xf32>
    %9 = arith.addf %6, %8 : vector<8x128xf32>
    %c0_7 = arith.constant 0 : index
    %c0_8 = arith.constant 0 : index
    %10 = vector.load %arg9[%c0_7, %c0_8] : memref<8x128xf32, #tpu.memory_space<vmem>>, vector<8x128xf32>
    %cst_9 = arith.constant dense<0.000000e+00> : vector<8x8xf32>
    %11 = tpu.matmul %9, %10, %cst_9 {dimension_numbers = #tpu.dot_dimension_numbers<[1], [1], [0], [0], [0, 0, 1, 0], [], []>} : vector<8x128xf32>, vector<8x128xf32>, vector<8x8xf32> -> vector<8x8xf32>
    %cst_10 = arith.constant dense<0xFF800000> : vector<8xf32>
    %12 = vector.multi_reduction <maximumf>, %11, %cst_10 [1] : vector<8x8xf32> to vector<8xf32>
    %13 = vector.shape_cast %12 : vector<8xf32> to vector<8x1xf32>
    %14 = vector.broadcast %13 : vector<8x1xf32> to vector<8x8xf32>
    %15 = arith.subf %11, %14 : vector<8x8xf32>
    %16 = math.exp %15 : vector<8x8xf32>
    %cst_11 = arith.constant dense<0.000000e+00> : vector<8xf32>
    %17 = vector.multi_reduction <add>, %16, %cst_11 [1] : vector<8x8xf32> to vector<8xf32>
    %18 = vector.shape_cast %17 : vector<8xf32> to vector<8x1xf32>
    %c0_12 = arith.constant 0 : index
    %c0_13 = arith.constant 0 : index
    %19 = vector.load %arg10[%c0_12, %c0_13] : memref<8x128xf32, #tpu.memory_space<vmem>>, vector<8x128xf32>
    %cst_14 = arith.constant dense<0.000000e+00> : vector<8x128xf32>
    %20 = tpu.matmul %16, %19, %cst_14 {dimension_numbers = #tpu.dot_dimension_numbers<[1], [0], [0], [1], [0, 0, 1, 1], [], []>} : vector<8x8xf32>, vector<8x128xf32>, vector<8x128xf32> -> vector<8x128xf32>
    %21 = tpu.reciprocal %18 : vector<8x1xf32> -> vector<8x1xf32>
    %22 = vector.broadcast %21 : vector<8x1xf32> to vector<8x128xf32>
    %23 = arith.mulf %20, %22 : vector<8x128xf32>
    %c0_15 = arith.constant 0 : index
    %c0_16 = arith.constant 0 : index
    %c0_17 = arith.constant 0 : index
    %24 = vector.load %arg8[%c0_15, %c0_16, %c0_17] : memref<1x8x128xf32, #tpu.memory_space<vmem>>, vector<1x8x128xf32>
    %25 = vector.shape_cast %24 : vector<1x8x128xf32> to vector<8x128xf32>
    %26 = vector.shape_cast %23 : vector<8x128xf32> to vector<1x8x128xf32>
    tpu.vector_store %arg8[%c0_15, %c0_16, %c0_17], %26 {strides = array<i32>} : memref<1x8x128xf32, #tpu.memory_space<vmem>>, vector<1x8x128xf32>,
    return
  }
  func.func @transform_0(%arg0: i32, %arg1: i32) -> (i32, i32, i32) {
    %c0_i32 = arith.constant 0 : i32
    %c0_i32_0 = arith.constant 0 : i32
    return %arg0, %arg1, %c0_i32 : i32, i32, i32
  }
  func.func @transform_1(%arg0: i32, %arg1: i32) -> (i32, i32, i32) {
    %c0_i32 = arith.constant 0 : i32
    %c0_i32_0 = arith.constant 0 : i32
    %c0_i32_1 = arith.constant 0 : i32
    return %arg0, %c0_i32, %c0_i32_0 : i32, i32, i32
  }
  func.func @transform_2(%arg0: i32, %arg1: i32) -> (i32, i32) {
    %c0_i32 = arith.constant 0 : i32
    %c0_i32_0 = arith.constant 0 : i32
    %c0_i32_1 = arith.constant 0 : i32
    return %c0_i32, %c0_i32_0 : i32, i32
  }
  func.func @transform_3(%arg0: i32, %arg1: i32) -> (i32, i32) {
    %c0_i32 = arith.constant 0 : i32
    %c0_i32_0 = arith.constant 0 : i32
    %c0_i32_1 = arith.constant 0 : i32
    return %c0_i32, %c0_i32_0 : i32, i32
  }
  func.func @transform_4(%arg0: i32, %arg1: i32) -> (i32, i32) {
    %c0_i32 = arith.constant 0 : i32
    %c0_i32_0 = arith.constant 0 : i32
    %c0_i32_1 = arith.constant 0 : i32
    return %c0_i32, %c0_i32_0 : i32, i32
  }
  func.func @transform_5(%arg0: i32, %arg1: i32) -> (i32, i32) {
    %c0_i32 = arith.constant 0 : i32
    %c0_i32_0 = arith.constant 0 : i32
    %c0_i32_1 = arith.constant 0 : i32
    return %c0_i32, %c0_i32_0 : i32, i32
  }
  func.func @transform_6(%arg0: i32, %arg1: i32) -> (i32, i32, i32) {
    %c0_i32 = arith.constant 0 : i32
    %c0_i32_0 = arith.constant 0 : i32
    return %arg0, %arg1, %c0_i32 : i32, i32, i32
  }
}

</mosaic_0001>

<bundles_post_ra>
// kernel: tpu_custom_call.1
= control target key start
LH: loop header
LB: loop body
LE: loop exit
PB: predicated region body
PF: predicated region fallthrough
CT: control target
= control target key end

     0   :  { %s1451_s0 = inlined_call_operand.hbm [shape: f32[2,8,32], index: 0, kind: input, shape index: {}]   ;;  %s1452_s1 = inlined_call_operand.hbm [shape: f32[2,8,32], index: 1, kind: input, shape index: {}]   ;;  %s1453_s2 = inlined_call_operand.hbm [shape: f32[32,128], index: 2, kind: input, shape index: {}]   ;;  %s1454_s3 = inlined_call_operand.vmem [shape: f32[1,128], index: 3, kind: input, shape index: {}]   ;;  %s1455_s4 = inlined_call_operand.hbm [shape: f32[32,256], index: 4, kind: input, shape index: {}]   ;;  %s1456_s5 = inlined_call_operand.vmem [shape: f32[1,256], index: 5, kind: input, shape index: {}]   ;;  %s1457_s6 = inlined_call_operand.hbm [shape: f32[2,8,128], index: 6, kind: output, shape index: {}]  }
   0x1   :  { %1459 = sst [smem:[#allocation18_spill]] %s1451_s0 }
   0x2   :  { %1460 = sst [smem:[#allocation19_spill]] %s1452_s1 }
   0x3   :  { %1461 = sst [smem:[#allocation20_spill]] %s1453_s2 }
   0x4   :  { %1462 = sst [smem:[#allocation21_spill]] %s1455_s4 }
   0x5   :  { %11 = vsyncpa [#allocation5], 0 }
   0x6   :  { %13 = vsyncpa [#allocation5 + $0x1], 0 }
   0x7   :  { %14 = vsyncpa [#allocation8], 0 }
   0x8   :  { %16 = vsyncpa [#allocation8 + $0x1], 0 }
   0x9   :  { %17 = vsyncpa [#allocation11], 0 }
   0xa   :  { %18 = vsyncpa [#allocation6], 0 }
   0xb   :  { %20 = vsyncpa [#allocation6 + $0x1], 0  ;;  %s1233_s21 = smov 0   ;;  %s1235_s22 = smov 0  }
   0xc   :  { %s1237_s23 = smov 0   ;;  %s1239_s24 = smov 0  }
   0xd   :  { %s1241_s25 = smov 0   ;;  %s1243_s26 = smov 0  }
   0xe LB: > { %s1264_s27 = sadd.s32 4294967295, %s1185_s26   ;;  %s834_s28 = sadd.s32 4294967294, %s1185_s26   ;;  %s1185_s26 = sphi %s1243_s26, %s26_s26   ;;  %s1181_s25 = sphi %s1241_s25, %s1484_s25   ;;  %s1177_s24 = sphi %s1239_s24, %s1483_s24   ;;  %s1173_s23 = sphi %s1237_s23, %s1482_s23   ;;  %s1169_s22 = sphi %s1235_s22, %s1481_s22   ;;  %s1165_s21 = sphi %s1233_s21, %s1480_s21  }
   0xf   : > { %p60_p0 = scmp.ne.s32.totalorder %s1169_s22, %s1165_s21  ;;  %p1458_p1 = scmp.eq.s32.totalorder %s1264_s27, 0 }
  0x10   : > { %p202_p3 = scmp.eq.s32.totalorder %s834_s28, 1  ;;  %p835_p5 = scmp.ge.s32.totalorder %s1185_s26, 1 }
  0x11   : > { %p1273_p4 = por %p1458_p1, %p60_p0  ;;  %p209_p7 = scmp.lt.s32.totalorder %s1185_s26, 3 }
  0x12   : > { %p1278_p6 = por %p202_p3, %p60_p0  ;;  %s1187_s8 = smov [#allocation9]  }
  0x13   : > { %p1283_p8 = pnand %p835_p5, %p209_p7  ;;  %s221_s9 = sshll.u32 %s1187_s8, 4  ;;  %s222_s9 = int_to_ptr.vmem [resolvable:$true] %s221_s9 }
  0x14   : > { %s1464_s30 = scalar_select %p1278_p6, 1, 0 }
  0x15   : > { %p901_p9 = pneg %p1283_p8  ;;  %s1188_s11 = smov [#allocation10]  }
  0x16   : > { %s237_s12 = sshll.u32 %s1188_s11, 4  ;;  %s996_s13 = scalar_lea.vmem %s222_s9, 512  ;;  %s238_s12 = int_to_ptr.vmem [resolvable:$true] %s237_s12 }
  0x17   : > { %p1292_p11 = pnand %p901_p9, %p1458_p1  ;;  %p997_p13 = scmp.ne.s32.totalorder %s222_s9, %s996_s13 }
  0x18   : > { %p1004_p5 = scmp.lt.s32.totalorder %s222_s9, %s222_s9  ;;  %p1005_p7 = scmp.lt.s32.totalorder %s996_s13, %s996_s13 }
  0x19   : > { %p987_p12 = pneg %p1292_p11 }
  0x1a   : > { %p1006_p10 = por %p1005_p7, %p1004_p5 }
  0x1b   : > { %p999_p0 = pnand %p997_p13, %p987_p12 }
  0x1d   : > { %p1000_p3 = pneg %p999_p0 }
  0x1f   : > { %p1007_p9 = pnand %p1006_p10, %p1000_p3 }
  0x21   : > { %1010 = shalt.err (!%p1007_p9)
}
  0x22   : > { %s1189_s14 = smov 128   ;;  %s1190_s15 = smov 8  }
  0x23   : > { %s1467_s2 = sld [smem:[#allocation20_spill]]  ;;  %s1022_s18 = scalar_lea.vmem %s238_s12, 1024 }
  0x24   : > { %p1023_p1 = scmp.ne.s32.totalorder %s238_s12, %s1022_s18  ;;  %p1030_p2 = scmp.lt.s32.totalorder %s238_s12, %s238_s12 }
  0x25   : > { %p1031_p6 = scmp.lt.s32.totalorder %s1022_s18, %s1022_s18 }
  0x26   : > { %p1025_p13 = pnand %p1023_p1, %p987_p12 }
  0x27   : > { %p1032_p5 = por %p1031_p6, %p1030_p2 }
  0x28   : > { %p1026_p0 = pneg %p1025_p13 }
  0x29   : > { %904 = dma.hbm_to_vmem [thread:$0]  (!%p1292_p11), %s1467_s2, 512, %s222_s9, [#allocation8], %s1189_s14, %s1189_s14, %s1190_s15  }
  0x2a   : > { %p1033_p10 = pnand %p1032_p5, %p1026_p0 }
  0x2c   : > { %1036 = shalt.err (!%p1033_p10)
}
  0x2d   : > { %s1191_s19 = smov 256   ;;  %s1192_s20 = smov 16  }
  0x2e   : > { %s1468_s4 = sld [smem:[#allocation21_spill]]  ;;  %s38_s9 = sadd.s32 1, %s1181_s25 }
  0x2f   : > { %s47_s11 = sadd.s32 1, %s1173_s23  ;;  %p40_p1 = scmp.ge.s32.totalorder %s38_s9, 2 }
  0x30   : > { %p54_p2 = scmp.ne.s32.totalorder %s1173_s23, %s1169_s22  ;;  %p55_p6 = scmp.eq.s32.totalorder %s1185_s26, 0 }
  0x31   : > { %p921_p12 = scmp.lt.s32.totalorder %s1185_s26, 2  ;;  %s1486_s9 = smov (%p40_p1, %s38_s9), 0 }
  0x32   : > { %p56_p3 = por %p55_p6, %p54_p2  ;;  %p1469_p7 = scmp.eq.s32.totalorder %s1264_s27, 1 }
  0x33   : > { %s42_s10 = ssub.s32 %s1181_s25, %s1486_s9  ;;  %s254_s14 = sand.u32 1, %s1173_s23  }
  0x34   : > { %907 = dma.hbm_to_vmem [thread:$0]  (!%p1292_p11), %s1468_s4, 1024, %s238_s12, [#allocation11], %s1191_s19, %s1191_s19, %s1192_s20  }
  0x35   : > { %p1324_p9 = por %p1469_p7, %p54_p2  ;;  %p45_p13 = scmp.eq.s32.totalorder %s42_s10, 0 }
  0x36   : > { %s839_s12 = sshll.u32 %s254_s14, 3  ;;  %s840_s15 = sshll.u32 %s1181_s25, 7 }
  0x37   : > { %s1333_s16 = scalar_select %p45_p13, %s1173_s23, %s47_s11  }
  0x38   : > { %s1471_s0 = sld [smem:[#allocation18_spill]]  ;;  %s258_s20 = scalar_lea.vmem [#allocation4], %s839_s12 }
  0x39   : > { %s266_s28 = sshll.u32 %s258_s20, 4  ;;  %p1340_p11 = pnand %p921_p12, %p56_p3  ;;  %s267_s28 = int_to_ptr.vmem [resolvable:$true] %s266_s28 }
  0x3a   : > { %s1473_s1 = sld [smem:[#allocation19_spill]]  ;;  %s255_s11 = scalar_lea.sflag [#allocation5], %s254_s14 }
  0x3b   : > { %p1039_p0 = pneg %p1340_p11  ;;  %s1050_s17 = scalar_lea.vmem %s267_s28, 128 }
  0x3c   : > { %p1051_p5 = scmp.ne.s32.totalorder %s267_s28, %s1050_s17  ;;  %s1193_s18 = smov [#allocation4]  }
  0x3d   : > { %s1055_s20 = sshll.u32 %s1193_s18, 4  ;;  %s1056_s20 = int_to_ptr.vmem [resolvable:$false] %s1055_s20 }
  0x3e   : > { %s264_s19 = scalar_lea.hbm %s1471_s0, %s840_s15  ;;  %p1053_p10 = pnand %p1051_p5, %p1039_p0 }
  0x3f   : > { %s1057_s0 = scalar_lea.vmem %s1056_s20, 256  ;;  %p1058_p2 = scmp.lt.s32.totalorder %s267_s28, %s1056_s20 }
  0x40   : > { %s1347_s4 = scalar_lea.hbm %s1473_s1, %s840_s15  ;;  %p1054_p1 = pneg %p1053_p10 }
  0x41   : > { %p1059_p6 = scmp.lt.s32.totalorder %s1057_s0, %s1050_s17 }
  0x43   : > { %p1060_p12 = por %p1059_p6, %p1058_p2 }
  0x45   : > { %p1061_p3 = pnand %p1060_p12, %p1054_p1 }
  0x47   : > { %1064 = shalt.err (!%p1061_p3)
}
  0x48   : > { %911 = dma.hbm_to_vmem [thread:$0]  (!%p1340_p11), %s264_s19, 128, %s267_s28, %s255_s11  }
  0x49   : > { %s273_s2 = sand.u32 1, %s1185_s26   ;;  %s277_s14 = scalar_lea.vmem [#allocation7], %s839_s12 }
  0x4a   : > { %s284_s15 = sshll.u32 %s277_s14, 4  ;;  %s274_s10 = scalar_lea.sflag [#allocation8], %s273_s2  ;;  %s285_s15 = int_to_ptr.vmem [resolvable:$true] %s284_s15 }
  0x4b   : > { %s1078_s1 = scalar_lea.vmem %s285_s15, 128  ;;  %s1194_s0 = smov [#allocation7]  }
  0x4c   : > { %p1079_p7 = scmp.ne.s32.totalorder %s285_s15, %s1078_s1  ;;  %s1083_s17 = sshll.u32 %s1194_s0, 4  ;;  %s1084_s17 = int_to_ptr.vmem [resolvable:$false] %s1083_s17 }
  0x4d   : > { %s1085_s18 = scalar_lea.vmem %s1084_s17, 256  ;;  %p1086_p10 = scmp.lt.s32.totalorder %s285_s15, %s1084_s17 }
  0x4e   : > { %p1081_p13 = pnand %p1079_p7, %p1039_p0  ;;  %p1087_p1 = scmp.lt.s32.totalorder %s1085_s18, %s1078_s1 }
  0x50   : > { %p1082_p5 = pneg %p1081_p13  ;;  %p1088_p2 = por %p1087_p1, %p1086_p10 }
  0x52   : > { %p1089_p6 = pnand %p1088_p2, %p1082_p5 }
  0x54   : > { %1092 = shalt.err (!%p1089_p6)
}
  0x55   : > { %914 = dma.hbm_to_vmem [thread:$0]  (!%p1340_p11), %s1347_s4, 128, %s285_s15, %s274_s10  }
  0x56   : > { %293 = sbr.rel (%p1283_p8) target bundleno = 867 (0x363), region = 44  ;;  %s1366_s12 = sand.u32 (!%p1283_p8), 1, %s1169_s22  }
  0x57   : > { %s1369_s19 = sshll.u32 (!%p1283_p8), %s1366_s12, 3  ;;  %s296_s1 = scalar_lea.sflag (!%p1283_p8), [#allocation5], %s1366_s12 }
  0x58   : > { %s299_s28 = scalar_lea.vmem (!%p1283_p8), [#allocation4], %s1369_s19 }
  0x5b   : > { %1144 = dma.done.wait (%p1273_p4), %s296_s1, 128  }
  0x5c   : > { %1146 = vsyncadd (%p1273_p4), %s296_s1, 4294967168  ;;  %s304_s4 = sand.u32 1, %s1264_s27   ;;  %s308_s8 = scalar_lea.vmem [#allocation7], %s1369_s19 }
  0x5d   : > { %s305_s7 = scalar_lea.sflag [#allocation8], %s304_s4 }
  0x5e   : > { %1148 = dma.done.wait (%p1273_p4), %s305_s7, 128  }
  0x5f   : > { %1150 = vsyncadd (%p1273_p4), %s305_s7, 4294967168  ;;  %p1474_p8 = scmp.eq.s32.totalorder %s1264_s27, 0 }
  0x61   : > { %1152 = dma.done.wait (%p1474_p8), [#allocation8], 512   ;;  %p1475_p11 = pmov %p1474_p8 }
  0x62   : > { %p1476_p0 = pmov %p1474_p8 }
  0x63   : > { %1154 = vsyncadd (%p1475_p11), [#allocation8], 4294966784 }
  0x64   : > { %1156 = dma.done.wait (%p1476_p0), [#allocation11], 1024   ;;  %p1477_p12 = pmov %p1476_p0 }
  0x65   : > { %v1195_v0 = vmov 0.0   ;;  %vm1196_vm0 = vmmov 0   ;;  %v362_v1 = vld [vmem:[#allocation10 + $0x38] sm:$0xff]  ;;  %v361_v2 = vld [vmem:[#allocation10 + $0x30] sm:$0xff]  ;;  %v360_v3 = vld [vmem:[#allocation10 + $0x28] sm:$0xff]  ;;  %vm375_vm1 = vcmask 261120   ;;  %v365_v15 = vlaneseq }
  0x66   : > { %1158 = vsyncadd (%p1477_p12), [#allocation11], 4294966272  ;;  %866 = vmatprep.subr.mxu1 %v1195_v0  ;;  %443 = vmatprep.mubr.f32.mxu0 %v1195_v0  ;;  %v359_v4 = vld [vmem:[#allocation10 + $0x20] sm:$0xff]  ;;  %v456_v5 = vld [vmem:[#allocation9 + $0x18] sm:$0xff]  ;;  %vm609_vm2 = vcmask 64512   ;;  %s854_s2 = sshll.u32 %s1177_s24, 7 }
  0x67   : > { %874 = vmatprep.mubr.msk.f32.mxu1 %vm1196_vm0, %v1195_v0  ;;  %403 = vmatprep.subr.mxu0 %v362_v1  ;;  %v358_v6 = vld [vmem:[#allocation10 + $0x18] sm:$0xff]  ;;  %v455_v7 = vld [vmem:[#allocation9 + $0x10] sm:$0xff]  ;;  %v454_v9 = vld [vmem:[#allocation9 + $0x8] sm:$0xff]  ;;  %v366_v16 = vshrl.u32 %v365_v15, 7  ;;  %s349_s14 = scalar_lea.vmem [#allocation12], %s1369_s19  ;;  %s1409_s17 = scalar_lea.hbm %s1457_s6, %s854_s2 }
  0x68   : > { %404 = vmatpush1.msra.mxu0 %v361_v2  ;;  %867 = vmatpush3.msra.mxu1 %v456_v5  ;;  %v357_v8 = vld [vmem:[#allocation10 + $0x10] sm:$0xff]  ;;  %v356_v10 = vld [vmem:[#allocation10 + $0x8] sm:$0xff]  ;;  %v355_v11 = vld [vmem:[#allocation10] sm:$0xff]  ;;  %s711_s15 = sshll.u32 %s349_s14, 4  ;;  %s697_s18 = scalar_lea.sflag [#allocation6], %s1366_s12  ;;  %s712_s15 = int_to_ptr.vmem [resolvable:$true] %s711_s15 }
  0x69   : > { %405 = vmatprep.subr.mxu0 %v360_v3  ;;  %868 = vmatprep.subr.mxu1 %v1195_v0  ;;  %v453_v12 = vld [vmem:[#allocation9] sm:$0xff]  ;;  %v354_v13 = vld [vmem:[%s308_s8] sm:$0xff]  ;;  %v367_v17 = vsub.s32 0, %v366_v16  ;;  %v371_v19 = vsub.s32 1, %v366_v16  ;;  %s1093_s1 = scalar_lea.vmem %s712_s15, 128  ;;  %s1197_s24 = smov [#allocation12]  }
  0x6a   : > { %406 = vmatpush1.msra.mxu0 %v359_v4  ;;  %869 = vmatpush3.msra.mxu1 %v455_v7  ;;  %v452_v14 = vld [vmem:[%s299_s28] sm:$0xff]  ;;  %p1094_p4 = scmp.ne.s32.totalorder %s712_s15, %s1093_s1  ;;  %s1097_s19 = sshll.u32 %s1197_s24, 4  ;;  %s1098_s19 = int_to_ptr.vmem [resolvable:$false] %s1097_s19 }
  0x6b   : > { %407 = vmatprep.subr.mxu0 %v358_v6  ;;  %870 = vmatprep.subr.mxu1 %v1195_v0  ;;  %v363_v18 = vld [vmem:[%s1456_s5] sm:$0x3]  ;;  %s1099_s28 = scalar_lea.vmem %s1098_s19, 256  ;;  %p1100_p13 = scmp.lt.s32.totalorder %s712_s15, %s1098_s19 }
  0x6c   : > { %408 = vmatpush1.msra.mxu0 %v357_v8  ;;  %871 = vmatpush3.msra.mxu1 %v454_v9  ;;  %v368_v20 = vrot.slane %v363_v18, %v367_v17  ;;  %v372_v21 = vrot.slane %v363_v18, %v371_v19  ;;  %v850_v22 = vld [vmem:[%s1454_s3] ss:$0 sm:$0xff]  ;;  %p1095_p3 = pnand %p1094_p4, %p1324_p9  ;;  %p1101_p5 = scmp.lt.s32.totalorder %s1099_s28, %s1093_s1 }
  0x6d   : > { %409 = vmatprep.subr.mxu0 %v356_v10  ;;  %872 = vmatprep.subr.mxu1 %v1195_v0 }
  0x6e   : > { %410 = vmatpush1.msra.mxu0 %v355_v11  ;;  %873 = vmatpush3.msra.mxu1 %v453_v12  ;;  %p1096_p7 = pneg %p1095_p3  ;;  %p1102_p10 = por %p1101_p5, %p1100_p13 }
  0x6f   : > { %849 = vmatmul.mubr.msk.f32.vlgmr.msra.gmra.mxu0 %vm375_vm1, %v354_v13  ;;  %875 = vmatmul.mubr.msk.f32.vlgmr.msra.gmra.mxu1 %vm375_vm1, %v452_v14 }
  0x70   : > { %877 = vmatprep.subr.mxu0 %v1195_v0  ;;  %882 = vmatprep.subr.mxu1 %v1195_v0  ;;  %p1103_p1 = pnand %p1102_p10, %p1096_p7 }
  0x71   : > { %879 = vmatprep.mubr.msk.f32.mxu0 %vm1196_vm0, %v1195_v0  ;;  %884 = vmatprep.mubr.msk.f32.mxu1 %vm1196_vm0, %v1195_v0 }
 0x12f   : > { %v445_v23 = vpop.f32.mrf.mxu0  ;;  %v534_v24 = vpop.f32.mrf.mxu1 }
 0x130   : > { %v446_v25 = vadd.f32 %v445_v23, %v368_v20  ;;  %v535_v27 = vadd.f32 %v850_v22, %v534_v24 }
 0x131   : > { %v447_v26 = vpop.f32.mrf.mxu0  ;;  %v876_v28 = vpop.f32.mrf.mxu1 }
 0x132   : > { %v448_v29 = vadd.f32 %v447_v26, %v372_v21  ;;  %878 = vmatpush3.xpose.msra.mxu0 %v446_v25 }
 0x134   : > { %883 = vmatpush3.msra.mxu1 %v448_v29 }
 0x135   : > { %880 = vmatmul.mubr.f32.vlgmr.msra.gmra.mxu0 %v535_v27 }
 0x1f5   : > { %v605_v30 = vpop.f32.mrf.mxu0 }
 0x1f6   : > { %v610_v31 = vsel %vm609_vm2, %v605_v30, -inf }
 0x1f7   : > { %611 = vmax.xlane.f32.xlu0 %v610_v31  ;;  %v881_v32 = vpop.f32.mrf.mxu0 }
 0x280   : > { %v612_v33 = vpop.xlane.xlu0 %611 }
 0x281   : > { %v613_v34 = vsub.f32 %v605_v30, %v612_v33 }
 0x283   : > { %v614_v35 = vmul.f32 1.442695, %v613_v34 }
 0x285   : > { %981 = vpow2.f32 %v614_v35 }
 0x292   : > { %v982_v36 = vpop.eup %981 }
 0x293   : > { %885 = vmatmul.mubr.msk.f32.vlgmr.msra.gmra.mxu1 %vm609_vm2, %v982_v36  ;;  %v616_v37 = vsel %vm609_vm2, %v982_v36, 0.0 }
 0x294   : > { %617 = vadd.xlane.f32.xlu0 %v616_v37 }
 0x31d   : > { %v618_v38 = vpop.xlane.xlu0 %617 }
 0x31e   : > { %983 = vrcp.f32 %v618_v38 }
 0x32b   : > { %v984_v39 = vpop.eup %983 }
 0x353   : > { %v689_v40 = vpop.f32.mrf.mxu1 }
 0x354   : > { %v694_v41 = vmul.f32 %v984_v39, %v689_v40 }
 0x355   : > { %v886_v42 = vpop.f32.mrf.mxu1 }
 0x356   : > { %695 = vst [vmem:[%s349_s14] sm:$0xff] %v694_v41 }
 0x357   : > { %1106 = shalt.err (!%p1103_p1)
}
 0x358   : > { %s1107_s4 = scalar_lea.hbm %s1409_s17, 128  ;;  %s1111_s8 = scalar_lea.hbm %s1457_s6, 256 }
 0x359   : > { %p1108_p2 = scmp.ne.s32.totalorder %s1409_s17, %s1107_s4  ;;  %p1112_p11 = scmp.lt.s32.totalorder %s1409_s17, %s1457_s6 }
 0x35a   : > { %p1113_p0 = scmp.lt.s32.totalorder %s1111_s8, %s1107_s4 }
 0x35b   : > { %p1109_p6 = pnand %p1108_p2, %p1324_p9 }
 0x35c   : > { %p1114_p12 = por %p1113_p0, %p1112_p11 }
 0x35d   : > { %p1110_p8 = pneg %p1109_p6 }
 0x35f   : > { %p1115_p4 = pnand %p1114_p12, %p1110_p8 }
 0x361   : > { %1118 = shalt.err (!%p1115_p4)
}
 0x362   : > { %899 = dma.vmem_to_hbm [thread:$0]  (%p1324_p9), %s712_s15, 128, %s1409_s17, %s697_s18  }
 0x363 PF: > { %s723_s11 = sand.u32 1, %s1165_s21   ;;  %p1478_p3 = scmp.ne.s32.totalorder %s1464_s30, 0 }
 0x364   : > { %p1479_p7 = scmp.ge.s32.totalorder %s1185_s26, 2  ;;  %s724_s20 = scalar_lea.sflag [#allocation6], %s723_s11 }
 0x366   : > { %p916_p13 = pnand %p1479_p7, %p1478_p3 }
 0x368   : > { %p917_p5 = pneg %p916_p13 }
 0x36a   : > { %1160 = dma.done.wait (%p917_p5), %s724_s20, 128  }
 0x36b   : > { %1162 = vsyncadd (%p917_p5), %s724_s20, 4294967168  ;;  %s26_s26 = sadd.s32 1, %s1185_s26   ;;  %s1480_s21 = smov %s1169_s22 }
 0x36c   : > { %p23_p10 = scmp.ge.s32.totalorder %s26_s26, 4   ;;  %s1481_s22 = smov %s1173_s23 }
 0x36d   : > { %s1482_s23 = smov %s1333_s16  ;;  %s1483_s24 = smov %s1181_s25 }
 0x36e   : > { %s1484_s25 = smov %s1486_s9  ;;  %25 = sbr.rel (!%p23_p10) target bundleno = 14 (0xe), region = 114 }
 0x373   :  { %729 = vsyncpa [#allocation5], 1 }
 0x374   :  { %731 = vsyncpa [#allocation5 + $0x1], 1 }
 0x375   :  { %732 = vsyncpa [#allocation8], 1 }
 0x376   :  { %734 = vsyncpa [#allocation8 + $0x1], 1 }
 0x377   :  { %735 = vsyncpa [#allocation11], 1 }
 0x378   :  { %736 = vsyncpa [#allocation6], 1 }
 0x379   :  { %738 = vsyncpa [#allocation6 + $0x1], 1 }

</bundles_post_ra>
